<compile_context>
chip_gen: v6e
topology: v6e:2x2x1
jax: 0.10.0
libtpu: 0.0.40
codegen_flags: <defaults>
</compile_context>

<pallas_src>
import functools
import math

import jax
import jax.numpy as jnp
from jax.experimental import pallas as pl
from jax.experimental.pallas import tpu as pltpu

LN_EPS = 1e-12
INV_SQRT2 = 1.0 / math.sqrt(2.0)


# ------------------------------ helper (in-kernel) ---------------------------

def _layernorm(y, g, b):
    # f32 LayerNorm over the last (lane) axis.
    mu = jnp.mean(y, axis=-1, keepdims=True)
    var = jnp.mean((y - mu) ** 2, axis=-1, keepdims=True)
    return (y - mu) * jax.lax.rsqrt(var + LN_EPS) * g + b


# ----------------------------- Pallas kernels --------------------------------

def _emb_layernorm_kernel(x_ref, g_ref, b_ref, o_ref):
    o_ref[...] = _layernorm(x_ref[...], g_ref[...], b_ref[...])


def _attn_block_kernel(x_ref, wqkv_ref, bqkv_ref, wo_ref, bo_ref,
                       g_ref, beta_ref, bias_ref,
                       o_ref, qkv_s, ctx_s, *, B, T, H, Dh):
    """Fused: QKV proj -> per-head attention -> out proj -> +residual -> LN."""
    D = H * Dh
    x = x_ref[...]                                       # (M, D) f32

    # Single fused QKV matmul (bf16 MXU inputs, f32 accumulation).
    qkv = jnp.dot(x.astype(jnp.bfloat16), wqkv_ref[...],
                  preferred_element_type=jnp.float32) + bqkv_ref[...]   # (M, 3D)
    qkv_s[...] = qkv.astype(jnp.bfloat16)                # bf16 staging for MXU

    bias = bias_ref[...]                                 # (B, T) additive mask
    scale = 1.0 / math.sqrt(Dh)

    # Per-(batch, head) attention on tiny (T, Dh) tiles; head split/merge is
    # done via static VMEM slices (no wrapper transposes, no HBM round trips).
    for b in range(B):
        bias_b = bias[b:b + 1, :]                        # (1, T), key-position mask
        r0, r1 = b * T, (b + 1) * T
        for h in range(H):
            c0 = h * Dh
            q_bh = qkv_s[r0:r1, c0:c0 + Dh]              # (T, Dh) bf16
            k_bh = qkv_s[r0:r1, D + c0:D + c0 + Dh]
            v_bh = qkv_s[r0:r1, 2 * D + c0:2 * D + c0 + Dh]

            # s = q @ k^T  (contract last dims), f32 accumulation.
            s = jax.lax.dot_general(
                q_bh, k_bh, (((1,), (1,)), ((), ())),
                preferred_element_type=jnp.float32) * scale             # (T, T)
            s = s + bias_b                               # broadcast over queries

            m = jnp.max(s, axis=-1, keepdims=True)
            p = jnp.exp(s - m)
            denom = jnp.sum(p, axis=-1, keepdims=True)
            p = p * pl.reciprocal(denom, approx=True)    # EUP reciprocal

            ctx_bh = jnp.dot(p.astype(jnp.bfloat16), v_bh,
                             preferred_element_type=jnp.float32)        # (T, Dh)
            ctx_s[r0:r1, c0:c0 + Dh] = ctx_bh.astype(jnp.bfloat16)

    # Output projection + residual + LayerNorm (f32 epilogue).
    attn = jnp.dot(ctx_s[...], wo_ref[...],
                   preferred_element_type=jnp.float32) + bo_ref[...]
    y = attn + x
    o_ref[...] = _layernorm(y, g_ref[...], beta_ref[...])


def _ffn_core(x_ref, wi_ref, bi_ref, wo2_ref, bo2_ref, g_ref, beta_ref):
    x = x_ref[...]                                       # (M, D) f32
    h = jnp.dot(x.astype(jnp.bfloat16), wi_ref[...],
                preferred_element_type=jnp.float32) + bi_ref[...]       # (M, I)
    h = 0.5 * h * (1.0 + jax.lax.erf(h * INV_SQRT2))     # exact erf GELU, f32
    y = jnp.dot(h.astype(jnp.bfloat16), wo2_ref[...],
                preferred_element_type=jnp.float32) + bo2_ref[...] + x
    return _layernorm(y, g_ref[...], beta_ref[...])


def _ffn_block_kernel(x_ref, wi_ref, bi_ref, wo2_ref, bo2_ref,
                      g_ref, beta_ref, o_ref):
    o_ref[...] = _ffn_core(x_ref, wi_ref, bi_ref, wo2_ref, bo2_ref,
                           g_ref, beta_ref)


def _ffn_block_head_kernel(x_ref, wi_ref, bi_ref, wo2_ref, bo2_ref,
                           g_ref, beta_ref, wh_ref, logits_ref):
    # Last layer: FFN block + fused QA heads.  Output is (2, M) so B*T sits on
    # the lane axis (lane-dense store) instead of an N=2 masked store.
    hn = _ffn_core(x_ref, wi_ref, bi_ref, wo2_ref, bo2_ref, g_ref, beta_ref)
    logits_ref[...] = jax.lax.dot_general(
        wh_ref[...], hn.astype(jnp.bfloat16),            # (2, D) x (M, D)
        (((1,), (1,)), ((), ())),
        preferred_element_type=jnp.float32)              # -> (2, M)


# --------------------------- pallas_call wrappers -----------------------------

def emb_layernorm(x, g, b):
    M, D = x.shape
    return pl.pallas_call(
        _emb_layernorm_kernel,
        out_shape=jax.ShapeDtypeStruct((M, D), jnp.float32),
    )(x, g, b)


def attn_block(x, wqkv, bqkv, wo, bo, g, b, mask_bias, *, B, T, H):
    M, D = x.shape
    Dh = D // H
    kern = functools.partial(_attn_block_kernel, B=B, T=T, H=H, Dh=Dh)
    return pl.pallas_call(
        kern,
        out_shape=jax.ShapeDtypeStruct((M, D), jnp.float32),
        scratch_shapes=[
            pltpu.VMEM((M, 3 * D), jnp.bfloat16),   # staged QKV
            pltpu.VMEM((M, D), jnp.bfloat16),       # assembled attention context
        ],
    )(x, wqkv, bqkv, wo, bo, g, b, mask_bias)


def ffn_block(x, wi, bi, wo2, bo2, g, b):
    M, D = x.shape
    return pl.pallas_call(
        _ffn_block_kernel,
        out_shape=jax.ShapeDtypeStruct((M, D), jnp.float32),
    )(x, wi, bi, wo2, bo2, g, b)


def ffn_block_with_head(x, wi, bi, wo2, bo2, g, b, w_heads_t):
    M, D = x.shape
    return pl.pallas_call(
        _ffn_block_head_kernel,
        out_shape=jax.ShapeDtypeStruct((2, M), jnp.float32),
    )(x, wi, bi, wo2, bo2, g, b, w_heads_t)


# ------------------------------- parameters ----------------------------------

def init_params(key, *, vocab, max_pos, type_vocab, D, L, I):
    keys = iter(jax.random.split(key, 8 + 8 * L))
    nrm = lambda shape: jax.random.normal(next(keys), shape, jnp.float32) * 0.02
    bf16 = lambda a: a.astype(jnp.bfloat16)

    params = {
        "word_emb": nrm((vocab, D)),
        "pos_emb": nrm((max_pos, D)),
        "type_emb": nrm((type_vocab, D)),
        "emb_ln_g": jnp.ones((1, D), jnp.float32),
        "emb_ln_b": jnp.zeros((1, D), jnp.float32),
        # row 0 = start_linear weights, row 1 = end_linear weights (no bias)
        "w_heads_t": bf16(nrm((2, D))),
        "layers": [],
    }
    for _ in range(L):
        wq, wk, wv = nrm((D, D)), nrm((D, D)), nrm((D, D))
        lp = {
            "wqkv": bf16(jnp.concatenate([wq, wk, wv], axis=1)),   # (D, 3D)
            "bqkv": jnp.zeros((1, 3 * D), jnp.float32),
            "wo": bf16(nrm((D, D))), "bo": jnp.zeros((1, D), jnp.float32),
            "ln1_g": jnp.ones((1, D), jnp.float32),
            "ln1_b": jnp.zeros((1, D), jnp.float32),
            "wi": bf16(nrm((D, I))), "bi": jnp.zeros((1, I), jnp.float32),
            "wo2": bf16(nrm((I, D))), "bo2": jnp.zeros((1, D), jnp.float32),
            "ln2_g": jnp.ones((1, D), jnp.float32),
            "ln2_b": jnp.zeros((1, D), jnp.float32),
        }
        params["layers"].append(lp)
    return params


# --------------------------------- forward ------------------------------------

def bert_qa_forward(params, input_ids, token_type_ids, attention_mask, *, num_heads):
    B, T = input_ids.shape
    D = params["word_emb"].shape[1]

    # Embedding lookups (gather) kept as plain-JAX glue.
    # TODO(synk): embedding gather has no clean small-scale Pallas equivalent;
    #             done with jnp.take outside the kernels.
    emb = (
        jnp.take(params["word_emb"], input_ids, axis=0)
        + jnp.take(params["pos_emb"], jnp.arange(T), axis=0)[None, :, :]
        + jnp.take(params["type_emb"], token_type_ids, axis=0)
    ).astype(jnp.float32)

    x = emb.reshape(B * T, D)
    x = emb_layernorm(x, params["emb_ln_g"], params["emb_ln_b"])

    # HF-BERT-style additive mask: 0 for real tokens, -10000 for padding.
    mask_bias = (1.0 - attention_mask.astype(jnp.float32)) * -10000.0   # (B, T)

    n_layers = len(params["layers"])
    logits = None
    for li, lp in enumerate(params["layers"]):
        x = attn_block(x, lp["wqkv"], lp["bqkv"], lp["wo"], lp["bo"],
                       lp["ln1_g"], lp["ln1_b"], mask_bias,
                       B=B, T=T, H=num_heads)
        if li == n_layers - 1:
            logits = ffn_block_with_head(x, lp["wi"], lp["bi"], lp["wo2"],
                                         lp["bo2"], lp["ln2_g"], lp["ln2_b"],
                                         params["w_heads_t"])            # (2, B*T)
        else:
            x = ffn_block(x, lp["wi"], lp["bi"], lp["wo2"], lp["bo2"],
                          lp["ln2_g"], lp["ln2_b"])

    logits = logits.reshape(2, B, T)
    return {"start_out": logits[0], "end_out": logits[1]}


# ----------------------------------- main --------------------------------------

if __name__ == "__main__":
    B, T = 2, 8
    D, H, L, I = 32, 4, 2, 64
    VOCAB, MAX_POS, TYPE_VOCAB = 50, 16, 2

    key = jax.random.PRNGKey(0)
    k_param, k_ids = jax.random.split(key)

    params = init_params(k_param, vocab=VOCAB, max_pos=MAX_POS,
                         type_vocab=TYPE_VOCAB, D=D, L=L, I=I)

    input_ids = jax.random.randint(k_ids, (B, T), 0, VOCAB, dtype=jnp.int32)
    token_type_ids = jnp.concatenate(
        [jnp.zeros((B, T // 2), jnp.int32), jnp.ones((B, T - T // 2), jnp.int32)],
        axis=1,
    )
    # second sequence has two padded positions at the end
    attention_mask = jnp.array(
        [[1, 1, 1, 1, 1, 1, 1, 1],
         [1, 1, 1, 1, 1, 1, 0, 0]], dtype=jnp.int32
    )

    out = bert_qa_forward(params, input_ids, token_type_ids, attention_mask,
                          num_heads=H)
    jax.block_until_ready(out)

    assert out["start_out"].shape == (B, T)
    assert out["end_out"].shape == (B, T)
    assert out["start_out"].dtype == jnp.float32
    print("KERNEL_OK")
</pallas_src>

<mosaic_0001>
module attributes {stable_mosaic.version = 11 : i64} {
  func.func @_emb_layernorm_kernel(%arg0: memref<16x32xf32, #tpu.memory_space<vmem>>, %arg1: memref<1x32xf32, #tpu.memory_space<vmem>>, %arg2: memref<1x32xf32, #tpu.memory_space<vmem>>, %arg3: memref<16x32xf32, #tpu.memory_space<vmem>>) attributes {dimension_semantics = [], scalar_prefetch = 0 : i64, scratch_operands = 0 : i64, tpu.core_type = #tpu.core_type<tc>} {
    %c0 = arith.constant 0 : index
    %c0_0 = arith.constant 0 : index
    %0 = vector.load %arg0[%c0, %c0_0] : memref<16x32xf32, #tpu.memory_space<vmem>>, vector<16x32xf32>
    %c0_1 = arith.constant 0 : index
    %c0_2 = arith.constant 0 : index
    %1 = vector.load %arg1[%c0_1, %c0_2] : memref<1x32xf32, #tpu.memory_space<vmem>>, vector<1x32xf32>
    %c0_3 = arith.constant 0 : index
    %c0_4 = arith.constant 0 : index
    %2 = vector.load %arg2[%c0_3, %c0_4] : memref<1x32xf32, #tpu.memory_space<vmem>>, vector<1x32xf32>
    %cst = arith.constant dense<0.000000e+00> : vector<16xf32>
    %3 = vector.multi_reduction <add>, %0, %cst [1] : vector<16x32xf32> to vector<16xf32>
    %4 = vector.shape_cast %3 : vector<16xf32> to vector<16x1xf32>
    %cst_5 = arith.constant 3.200000e+01 : f32
    %5 = vector.broadcast %cst_5 : f32 to vector<16x1xf32>
    %6 = arith.divf %4, %5 : vector<16x1xf32>
    %7 = vector.broadcast %6 : vector<16x1xf32> to vector<16x32xf32>
    %8 = arith.subf %0, %7 : vector<16x32xf32>
    %9 = arith.mulf %8, %8 : vector<16x32xf32>
    %cst_6 = arith.constant dense<0.000000e+00> : vector<16xf32>
    %10 = vector.multi_reduction <add>, %9, %cst_6 [1] : vector<16x32xf32> to vector<16xf32>
    %11 = vector.shape_cast %10 : vector<16xf32> to vector<16x1xf32>
    %cst_7 = arith.constant 3.200000e+01 : f32
    %12 = vector.broadcast %cst_7 : f32 to vector<16x1xf32>
    %13 = arith.divf %11, %12 : vector<16x1xf32>
    %14 = vector.broadcast %6 : vector<16x1xf32> to vector<16x32xf32>
    %15 = arith.subf %0, %14 : vector<16x32xf32>
    %cst_8 = arith.constant 9.99999996E-13 : f32
    %16 = vector.broadcast %cst_8 : f32 to vector<16x1xf32>
    %17 = arith.addf %13, %16 : vector<16x1xf32>
    %18 = math.rsqrt %17 : vector<16x1xf32>
    %19 = vector.broadcast %18 : vector<16x1xf32> to vector<16x32xf32>
    %20 = arith.mulf %15, %19 : vector<16x32xf32>
    %21 = vector.broadcast %1 : vector<1x32xf32> to vector<16x32xf32>
    %22 = arith.mulf %20, %21 : vector<16x32xf32>
    %23 = vector.broadcast %2 : vector<1x32xf32> to vector<16x32xf32>
    %24 = arith.addf %22, %23 : vector<16x32xf32>
    %c0_9 = arith.constant 0 : index
    %c0_10 = arith.constant 0 : index
    %25 = vector.load %arg3[%c0_9, %c0_10] : memref<16x32xf32, #tpu.memory_space<vmem>>, vector<16x32xf32>
    tpu.vector_store %arg3[%c0_9, %c0_10], %24 {strides = array<i32>} : memref<16x32xf32, #tpu.memory_space<vmem>>, vector<16x32xf32>,
    return
  }
}

</mosaic_0001>

<bundles_post_ra>
// kernel: tpu_custom_call.1
= control target key start
LH: loop header
LB: loop body
LE: loop exit
PB: predicated region body
PF: predicated region fallthrough
CT: control target
= control target key end

     0   :  { %8 = vsyncpa [#allocation3], 0  ;;  %s198_s0 = inlined_call_operand.hbm [shape: f32[16,32], index: 0, kind: input, shape index: {}]   ;;  %s199_s1 = inlined_call_operand.vmem [shape: f32[1,32], index: 1, kind: input, shape index: {}]   ;;  %s200_s2 = inlined_call_operand.vmem [shape: f32[1,32], index: 2, kind: input, shape index: {}]   ;;  %s201_s3 = inlined_call_operand.hbm [shape: f32[16,32], index: 3, kind: output, shape index: {}]  }
   0x1   :  { %9 = vsyncpa [#allocation4], 0  ;;  %s150_s12 = smov [#allocation2]  }
   0x2   :  { %s15_s13 = sshll.u32 %s150_s12, 4  ;;  %s16_s13 = int_to_ptr.vmem [resolvable:$true] %s15_s13 }
   0x3   :  { %s114_s14 = scalar_lea.vmem %s16_s13, 256  ;;  %p119_p1 = scmp.lt.s32.totalorder %s16_s13, %s16_s13 }
   0x4   :  { %p115_p0 = scmp.ne.s32.totalorder %s16_s13, %s114_s14  ;;  %p120_p2 = scmp.lt.s32.totalorder %s114_s14, %s114_s14 }
   0x6   :  { %p121_p3 = por %p120_p2, %p119_p1 }
   0x8   :  { %p122_p4 = pnand %p121_p3, %p115_p0 }
   0xa   :  { %125 = shalt.err (!%p122_p4)
}
   0xb   :  { %s151_s15 = smov 128   ;;  %s152_s16 = smov 8  }
   0xc   :  { %21 = dma.hbm_to_vmem [thread:$0]  %s198_s0, 256, %s16_s13, [#allocation3], %s151_s15, %s151_s15, %s152_s16  }
   0xd   :  { %146 = dma.done.wait [#allocation3], 256  }
   0xe   :  { %147 = vsyncadd [#allocation3], 4294967040  ;;  %vm33_vm0 = vcmask 261120   ;;  %v29_v0 = vld [vmem:[#allocation2] sm:$0xff]  ;;  %v30_v1 = vld [vmem:[#allocation2 + $0x8] sm:$0xff]  ;;  %s153_s22 = smov [#allocation5]  }
   0xf   :  { %v34_v2 = vsel %vm33_vm0, %v29_v0, 0.0  ;;  %v37_v3 = vsel %vm33_vm0, %v30_v1, 0.0  ;;  %v96_v21 = vld [vmem:[%s199_s1] ss:$0 sm:$0xff]  ;;  %s84_s23 = sshll.u32 %s153_s22, 4  ;;  %s85_s23 = int_to_ptr.vmem [resolvable:$true] %s84_s23 }
  0x10   :  { %35 = vadd.xlane.f32.xlu0 %v34_v2  ;;  %v97_v23 = vld [vmem:[%s200_s2] ss:$0 sm:$0xff]  ;;  %s126_s24 = scalar_lea.vmem %s85_s23, 256  ;;  %p131_p6 = scmp.lt.s32.totalorder %s85_s23, %s85_s23 }
  0x11   :  { %p127_p5 = scmp.ne.s32.totalorder %s85_s23, %s126_s24  ;;  %p132_p7 = scmp.lt.s32.totalorder %s126_s24, %s126_s24 }
  0x13   :  { %p133_p8 = por %p132_p7, %p131_p6 }
  0x14   :  { %38 = vadd.xlane.f32.xlu0 %v37_v3 }
  0x15   :  { %p134_p9 = pnand %p133_p8, %p127_p5 }
  0x99   :  { %v36_v4 = vpop.xlane.xlu0 %35 }
  0x9a   :  { %v41_v5 = vmul.f32 0.03125, %v36_v4 }
  0x9c   :  { %v43_v6 = vsub.f32 %v29_v0, %v41_v5 }
  0x9d   :  { %v39_v7 = vpop.xlane.xlu0 %38 }
  0x9e   :  { %v42_v8 = vmul.f32 0.03125, %v39_v7  ;;  %v45_v9 = vmul.f32 %v43_v6, %v43_v6 }
  0xa0   :  { %v44_v10 = vsub.f32 %v30_v1, %v42_v8  ;;  %v47_v11 = vsel %vm33_vm0, %v45_v9, 0.0 }
  0xa1   :  { %48 = vadd.xlane.f32.xlu1 %v47_v11 }
  0xa2   :  { %v46_v12 = vmul.f32 %v44_v10, %v44_v10 }
  0xa4   :  { %v50_v13 = vsel %vm33_vm0, %v46_v12, 0.0 }
  0xa5   :  { %51 = vadd.xlane.f32.xlu1 %v50_v13 }
 0x12a   :  { %v49_v14 = vpop.xlane.xlu1 %48 }
 0x12b   :  { %v53_v15 = vmul.f32 0.03125, %v49_v14 }
 0x12d   :  { %v55_v16 = vadd.f32 1e-12, %v53_v15 }
 0x12e   :  { %v52_v17 = vpop.xlane.xlu1 %51 }
 0x12f   :  { %102 = vrsqrt.f32 %v55_v16  ;;  %v54_v18 = vmul.f32 0.03125, %v52_v17 }
 0x131   :  { %v56_v19 = vadd.f32 1e-12, %v54_v18 }
 0x133   :  { %104 = vrsqrt.f32 %v56_v19 }
 0x13c   :  { %v103_v20 = vpop.eup %102 }
 0x13d   :  { %v59_v22 = vmul.f32 %v103_v20, %v43_v6 }
 0x13f   :  { %v67_v24 = vmul.f32 %v96_v21, %v59_v22 }
 0x140   :  { %v105_v25 = vpop.eup %104 }
 0x141   :  { %v60_v26 = vmul.f32 %v105_v25, %v44_v10  ;;  %v75_v27 = vadd.f32 %v97_v23, %v67_v24 }
 0x143   :  { %v68_v28 = vmul.f32 %v96_v21, %v60_v26  ;;  %77 = vst.msk [vmem:[#allocation5] sm:$0xff] %vm33_vm0, %v75_v27 }
 0x145   :  { %v76_v29 = vadd.f32 %v97_v23, %v68_v28 }
 0x147   :  { %78 = vst.msk [vmem:[#allocation5 + $0x8] sm:$0xff] %vm33_vm0, %v76_v29 }
 0x148   :  { %137 = shalt.err (!%p134_p9)
}
 0x149   :  { %90 = dma.vmem_to_hbm [thread:$0]  %s85_s23, 256, %s201_s3, [#allocation4], %s151_s15, %s151_s15, %s152_s16  }
 0x14a   :  { %148 = dma.done.wait [#allocation4], 256  }
 0x14b   :  { %149 = vsyncadd [#allocation4], 4294967040 }
 0x14c   :  { %94 = vsyncpa [#allocation3], 1 }
 0x14d   :  { %95 = vsyncpa [#allocation4], 1 }

</bundles_post_ra>
